<compile_context>
chip_gen: v7x
topology: tpu7x:2x2x1
jax: 0.10.0
libtpu: 0.0.40
codegen_flags: <defaults>
</compile_context>

<pallas_src>
import jax
import jax.numpy as jnp
from jax.experimental import pallas as pl
from jax.experimental.pallas import tpu as pltpu

_LANE = 128
_VMEM_LIMIT = 48 * 1024 * 1024     # stay below v7x's 64 MiB physical VMEM
_TILE_BUDGET = 24 * 1024 * 1024    # working-set target used when choosing tiles


def _round_up(n, m):
    return ((n + m - 1) // m) * m


def _pick_tile(n, cap):
    """Largest 128 * 2^j <= cap that divides n (n must be a multiple of 128)."""
    t = _LANE
    while t * 2 <= cap and n % (t * 2) == 0:
        t *= 2
    return t


# ----------------------------------------------------------------------------
# Conv kernels:  out = bf16( tanh(A_tile @ XW + b) @ W_next )
#   XW = (previous layer's activations) @ W is precomputed / fused upstream, so
#   the per-step body is one bf16 MXU matmul with f32 accumulation.
# ----------------------------------------------------------------------------
def _gcn_conv_kernel_single(a_ref, xw_ref, b_ref, wn_ref, o_ref):
    # Reduction axis fully resident: no k grid axis, no accumulator scratch.
    acc = jnp.dot(a_ref[...], xw_ref[...], preferred_element_type=jnp.float32)
    h = jnp.tanh(acc + b_ref[...]).astype(jnp.bfloat16)
    o_ref[...] = jnp.dot(h, wn_ref[...],
                         preferred_element_type=jnp.float32).astype(jnp.bfloat16)


def _gcn_conv_kernel_tiled(a_ref, xw_ref, b_ref, wn_ref, o_ref, acc_ref):
    k = pl.program_id(1)

    @pl.when(k == 0)
    def _():
        acc_ref[...] = jnp.zeros_like(acc_ref)

    acc_ref[...] += jnp.dot(a_ref[...], xw_ref[...],
                            preferred_element_type=jnp.float32)

    @pl.when(k == pl.num_programs(1) - 1)
    def _():
        h = jnp.tanh(acc_ref[...] + b_ref[...]).astype(jnp.bfloat16)
        o_ref[...] = jnp.dot(h, wn_ref[...],
                             preferred_element_type=jnp.float32).astype(jnp.bfloat16)


def gcn_conv_layer(a_bf16, xw_bf16, b_row, w_next, *, tile_m, tile_k):
    """A_hat propagation with the next layer's input transform fused in the epilogue.

    a_bf16:  [N_pad, N_pad] bf16 normalized adjacency.
    xw_bf16: [N_pad, Fin_pad] bf16, already H @ W (hoisted out of the grid).
    b_row:   [1, Fin_pad] f32 bias.
    w_next:  [Fin_pad, Fout_pad] bf16 next-layer weight (lane-dense output).
    """
    n_pad = a_bf16.shape[0]
    f_in = xw_bf16.shape[1]
    f_out = w_next.shape[1]
    cost = pl.CostEstimate(
        flops=2 * n_pad * n_pad * f_in + 2 * n_pad * f_in * f_out,
        transcendentals=n_pad * f_in,
        bytes_accessed=(2 * n_pad * n_pad + 2 * n_pad * f_in
                        + 2 * n_pad * f_out + 4 * f_in + 2 * f_in * f_out),
    )
    out_shape = jax.ShapeDtypeStruct((n_pad, f_out), jnp.bfloat16)

    if tile_k >= n_pad:
        grid_spec = pltpu.PrefetchScalarGridSpec(
            num_scalar_prefetch=0,
            grid=(n_pad // tile_m,),
            in_specs=[
                pl.BlockSpec((tile_m, n_pad), lambda i: (i, 0)),   # A row panel
                pl.BlockSpec((n_pad, f_in), lambda i: (0, 0)),     # XW (resident)
                pl.BlockSpec((1, f_in), lambda i: (0, 0)),         # bias
                pl.BlockSpec((f_in, f_out), lambda i: (0, 0)),     # W_next
            ],
            out_specs=pl.BlockSpec((tile_m, f_out), lambda i: (i, 0)),
        )
        kernel = _gcn_conv_kernel_single
        semantics = ("parallel",)
    else:
        grid_spec = pltpu.PrefetchScalarGridSpec(
            num_scalar_prefetch=0,
            grid=(n_pad // tile_m, n_pad // tile_k),
            in_specs=[
                pl.BlockSpec((tile_m, tile_k), lambda i, k: (i, k)),
                pl.BlockSpec((tile_k, f_in), lambda i, k: (k, 0)),
                pl.BlockSpec((1, f_in), lambda i, k: (0, 0)),
                pl.BlockSpec((f_in, f_out), lambda i, k: (0, 0)),
            ],
            out_specs=pl.BlockSpec((tile_m, f_out), lambda i, k: (i, 0)),
            scratch_shapes=[pltpu.VMEM((tile_m, f_in), jnp.float32)],
        )
        kernel = _gcn_conv_kernel_tiled
        semantics = ("parallel", "arbitrary")

    return pl.pallas_call(
        kernel,
        out_shape=out_shape,
        grid_spec=grid_spec,
        compiler_params=pltpu.CompilerParams(
            dimension_semantics=semantics,
            vmem_limit_bytes=_VMEM_LIMIT,
        ),
        cost_estimate=cost,
    )(a_bf16, xw_bf16, b_row, w_next)


# ----------------------------------------------------------------------------
# Head: pooled conv3 (PA @ (H2 W3), b3 folded into fc1 bias) + fc1..fc4.
#   grid = (N_pad // tile_k,) "arbitrary", [B_pad, F_pad] f32 accumulator.
# ----------------------------------------------------------------------------
def _head_kernel(pa_ref, h_ref, fw1_ref, fb1_ref, fw2_ref, fb2_ref,
                 fw3_ref, fb3_ref, fw4_ref, fb4_ref, out_ref, acc_ref):
    k = pl.program_id(0)

    @pl.when(k == 0)
    def _():
        acc_ref[...] = jnp.zeros_like(acc_ref)

    # pooled conv3 output (bias b3 already folded into fb1_ref).
    acc_ref[...] += jnp.dot(pa_ref[...], h_ref[...],
                            preferred_element_type=jnp.float32)

    @pl.when(k == pl.num_programs(0) - 1)
    def _():
        z = jnp.dot(acc_ref[...], fw1_ref[...], preferred_element_type=jnp.float32)
        z = jnp.maximum(z + fb1_ref[...], 0.0)
        z = jnp.maximum(jnp.dot(z, fw2_ref[...], preferred_element_type=jnp.float32)
                        + fb2_ref[...], 0.0)
        z = jnp.maximum(jnp.dot(z, fw3_ref[...], preferred_element_type=jnp.float32)
                        + fb3_ref[...], 0.0)
        out_ref[...] = (jnp.dot(z, fw4_ref[...], preferred_element_type=jnp.float32)
                        + fb4_ref[...])


def regressor_head(pa_bf16, h_bf16, fw1, fb1_eff, fw2, fb2, fw3, fb3, fw4, fb4,
                   *, tile_k):
    b_pad, n_pad = pa_bf16.shape
    f_pad = h_bf16.shape[1]
    h1, h2, h3, od = fw1.shape[1], fw2.shape[1], fw3.shape[1], fw4.shape[1]
    cost = pl.CostEstimate(
        flops=2 * b_pad * (n_pad * f_pad + f_pad * h1 + h1 * h2 + h2 * h3 + h3 * od),
        transcendentals=0,
        bytes_accessed=(2 * b_pad * n_pad + 2 * n_pad * f_pad
                        + 4 * (f_pad * h1 + h1 * h2 + h2 * h3 + h3 * od)
                        + 4 * b_pad * (h1 + od)),
    )
    return pl.pallas_call(
        _head_kernel,
        out_shape=jax.ShapeDtypeStruct((b_pad, od), jnp.float32),
        grid_spec=pltpu.PrefetchScalarGridSpec(
            num_scalar_prefetch=0,
            grid=(n_pad // tile_k,),
            in_specs=[
                pl.BlockSpec((b_pad, tile_k), lambda k: (0, k)),   # PA panel
                pl.BlockSpec((tile_k, f_pad), lambda k: (k, 0)),   # H2 @ W3 panel
                pl.BlockSpec((f_pad, h1), lambda k: (0, 0)),
                pl.BlockSpec((b_pad, h1), lambda k: (0, 0)),
                pl.BlockSpec((h1, h2), lambda k: (0, 0)),
                pl.BlockSpec((1, h2), lambda k: (0, 0)),
                pl.BlockSpec((h2, h3), lambda k: (0, 0)),
                pl.BlockSpec((1, h3), lambda k: (0, 0)),
                pl.BlockSpec((h3, od), lambda k: (0, 0)),
                pl.BlockSpec((1, od), lambda k: (0, 0)),
            ],
            out_specs=pl.BlockSpec((b_pad, od), lambda k: (0, 0)),
            scratch_shapes=[pltpu.VMEM((b_pad, f_pad), jnp.float32)],
        ),
        compiler_params=pltpu.CompilerParams(
            dimension_semantics=("arbitrary",),
            vmem_limit_bytes=_VMEM_LIMIT,
        ),
        cost_estimate=cost,
    )(pa_bf16, h_bf16, fw1, fb1_eff, fw2, fb2, fw3, fb3, fw4, fb4)


# ----------------------------------------------------------------------------
# Graph preprocessing + tile selection + forward wrapper.
# ----------------------------------------------------------------------------
def build_normalized_adj(edge_index, num_nodes):
    """D^-1/2 (A + I) D^-1/2, matching PyG GCNConv's gcn_norm with self loops.

    Assumes edge_index already contains both directions of each undirected edge
    (standard PyG convention)."""
    src, dst = edge_index
    a = jnp.zeros((num_nodes, num_nodes), jnp.float32)
    a = a.at[src, dst].set(1.0)
    a = jnp.maximum(a, jnp.eye(num_nodes, dtype=jnp.float32))
    deg = a.sum(axis=1)
    dinv = jax.lax.rsqrt(deg)
    return a * dinv[:, None] * dinv[None, :]


def _choose_conv_tiles(n_pad, f_in_pad, f_out_pad):
    # Row tile: large enough to amortize the ~0.35us/grid-step overhead, but keep
    # >= 2 row tiles (when the graph allows) so v7x megacore can shard the
    # "parallel" axis across both TensorCores.
    tile_m = _pick_tile(n_pad, min(512, max(_LANE, n_pad // 2)))

    def vmem_bytes(tk):
        return (2 * tile_m * tk * 2            # A panels, bf16, double-buffered
                + 2 * tk * f_in_pad * 2        # XW panels, bf16, double-buffered
                + 2 * tile_m * f_out_pad * 2   # output panels, bf16
                + tile_m * f_in_pad * 4        # f32 accumulator
                + f_in_pad * (f_out_pad * 2 + 4))

    # Collapse the reduction axis when a full-width A row panel fits comfortably.
    if vmem_bytes(n_pad) <= _TILE_BUDGET:
        return tile_m, n_pad
    tile_k = _pick_tile(n_pad, 1024)
    while vmem_bytes(tile_k) > _TILE_BUDGET and tile_k > _LANE:
        tile_k //= 2
    return tile_m, tile_k


def gcn_regressor_forward(params, x, edge_index, batch, natoms, nbonds, mw,
                          num_graphs, *, conv_tiles=None):
    f32 = jnp.float32
    n, atom_dim = x.shape
    conv_hidden = params["w1"].shape[1]
    h1 = params["fb1"].shape[-1]
    n_pad = _round_up(n, _LANE)
    f1_pad = _round_up(conv_hidden, _LANE)   # width of XW1 / H1
    f2_pad = _round_up(conv_hidden, _LANE)   # width of XW2 / H2
    f3_pad = _round_up(atom_dim, _LANE)      # width of H2 @ W3
    b_pad = max(8, _round_up(num_graphs, 8))

    # ---- graph-structure preprocessing (XLA; depends only on topology) --------
    a_hat = build_normalized_adj(edge_index, n)
    a_pad = jnp.zeros((n_pad, n_pad), f32).at[:n, :n].set(a_hat)
    a_bf16 = a_pad.astype(jnp.bfloat16)      # halves the dominant HBM stream

    onehot = (batch[None, :] == jnp.arange(num_graphs)[:, None]).astype(f32)
    counts = onehot.sum(axis=1, keepdims=True)
    nonempty = (counts > 0).astype(f32)                       # [B, 1]
    pool = onehot / jnp.maximum(counts, 1.0)                  # rows sum to 1
    pool_pad = jnp.zeros((b_pad, n_pad), f32).at[:num_graphs, :n].set(pool)
    # PA = pool @ A_hat is pure graph structure; with it conv3 folds into the
    # head (pool @ h3 == PA @ (H2 W3) + b3) so h3 never touches HBM.
    pa_bf16 = (pool_pad @ a_pad).astype(jnp.bfloat16)         # [b_pad, n_pad]

    # ---- parameters, zero-padded to lane-dense (x128) feature widths ----------
    w1p = jnp.zeros((atom_dim, f1_pad), f32).at[:, :conv_hidden].set(params["w1"])
    b1p = jnp.zeros((1, f1_pad), f32).at[:, :conv_hidden].set(params["b1"])
    w2p = jnp.zeros((f1_pad, f2_pad), f32).at[:conv_hidden, :conv_hidden].set(params["w2"])
    b2p = jnp.zeros((1, f2_pad), f32).at[:, :conv_hidden].set(params["b2"])
    w3p = jnp.zeros((f2_pad, f3_pad), f32).at[:conv_hidden, :atom_dim].set(params["w3"])
    fw1ap = jnp.zeros((f3_pad, h1), f32).at[:atom_dim, :].set(params["fw1a"])

    # XW1 = X @ W1 hoisted out of the conv grid (tiny input-transform matmul).
    x_pad = jnp.zeros((n_pad, atom_dim), f32).at[:n, :].set(x)
    xw1 = (x_pad @ w1p).astype(jnp.bfloat16)                  # [n_pad, f1_pad]

    # cat([h3, x_global]) @ fw1 == h3 @ fw1a + x_global * fw1b; x_global is the
    # per-graph scalar mean(natoms, nbonds, mw).  Fold it and the conv3 bias
    # (b3 @ fw1a) into a per-graph fc1 bias, masked by the non-empty indicator so
    # empty graphs reproduce the un-fused mean-pool-of-nothing == 0 behaviour.
    gf_mean = jnp.stack([natoms, nbonds, mw], axis=1).mean(axis=1)        # [B]
    gf_pad = jnp.zeros((b_pad, 1), f32).at[:num_graphs, 0].set(gf_mean)
    ne_pad = jnp.zeros((b_pad, 1), f32).at[:num_graphs, :].set(nonempty)
    b3_fw1 = params["b3"] @ params["fw1a"]                                # [1, h1]
    fc1_bias = ne_pad * (b3_fw1 + gf_pad * params["fw1b"]) + params["fb1"]

    # ---- conv1 / conv2 (dropout p=0.5 is identity in eval mode) ---------------
    if conv_tiles is None:
        tile_m, tile_k = _choose_conv_tiles(n_pad, f1_pad, f2_pad)
    else:
        tile_m, tile_k = conv_tiles
    w2p_bf = w2p.astype(jnp.bfloat16)
    w3p_bf = w3p.astype(jnp.bfloat16)
    # conv1 epilogue emits XW2 = tanh(A XW1 + b1) @ W2 (next layer's input
    # transform fused; H1 never round-trips HBM).
    xw2 = gcn_conv_layer(a_bf16, xw1, b1p, w2p_bf, tile_m=tile_m, tile_k=tile_k)
    # conv2 epilogue emits H2 @ W3 (conv3's input transform) for the folded head.
    h2w3 = gcn_conv_layer(a_bf16, xw2, b2p, w3p_bf, tile_m=tile_m, tile_k=tile_k)

    # ---- pooled conv3 + 4-layer regressor head ---------------------------------
    tile_hk = _pick_tile(n_pad, 2048)
    out = regressor_head(pa_bf16, h2w3, fw1ap, fc1_bias,
                         params["fw2"], params["fb2"],
                         params["fw3"], params["fb3"],
                         params["fw4"], params["fb4"], tile_k=tile_hk)
    return out[:num_graphs]


# ----------------------------------------------------------------------------
# Pure-JAX f32 reference (mirrors the PyTorch module in eval mode).
# ----------------------------------------------------------------------------
def reference_forward(params, x, edge_index, batch, natoms, nbonds, mw, num_graphs):
    n = x.shape[0]
    a_hat = build_normalized_adj(edge_index, n)
    h = jnp.tanh(a_hat @ (x @ params["w1"]) + params["b1"])
    h = jnp.tanh(a_hat @ (h @ params["w2"]) + params["b2"])   # dropout: identity (eval)
    h = a_hat @ (h @ params["w3"]) + params["b3"]
    gf_mean = jnp.stack([natoms, nbonds, mw], axis=1).mean(axis=1)
    x_global = gf_mean[batch][:, None]
    hcat = jnp.concatenate([h, x_global], axis=1)
    onehot = (batch[None, :] == jnp.arange(num_graphs)[:, None]).astype(jnp.float32)
    pool = onehot / jnp.maximum(onehot.sum(axis=1, keepdims=True), 1.0)
    pooled = pool @ hcat
    fw1 = jnp.concatenate([params["fw1a"], params["fw1b"]], axis=0)
    z = jnp.maximum(pooled @ fw1 + params["fb1"], 0.0)
    z = jnp.maximum(z @ params["fw2"] + params["fb2"], 0.0)
    z = jnp.maximum(z @ params["fw3"] + params["fb3"], 0.0)
    return z @ params["fw4"] + params["fb4"]


# ----------------------------------------------------------------------------
# Parameter init (Linear-style uniform; fc1's weight pre-split into the
# node-feature block [F, H1] and the x_global row [1, H1]).
# ----------------------------------------------------------------------------
def init_params(key, atom_feature_dim, conv_hidden, output_dim,
                h1=128, h2=64, h3=32):
    ks = jax.random.split(key, 7)

    def lin(k, fan_in, fan_out):
        scale = 1.0 / jnp.sqrt(jnp.float32(fan_in))
        return jax.random.uniform(k, (fan_in, fan_out), jnp.float32, -scale, scale)

    fw1 = lin(ks[3], atom_feature_dim + 1, h1)
    return {
        "w1": lin(ks[0], atom_feature_dim, conv_hidden),
        "b1": jnp.full((1, conv_hidden), 0.01, jnp.float32),
        "w2": lin(ks[1], conv_hidden, conv_hidden),
        "b2": jnp.full((1, conv_hidden), 0.02, jnp.float32),
        "w3": lin(ks[2], conv_hidden, atom_feature_dim),
        "b3": jnp.full((1, atom_feature_dim), 0.03, jnp.float32),
        "fw1a": fw1[:atom_feature_dim], "fw1b": fw1[atom_feature_dim:],
        "fb1": jnp.full((1, h1), 0.04, jnp.float32),
        "fw2": lin(ks[4], h1, h2), "fb2": jnp.full((1, h2), 0.05, jnp.float32),
        "fw3": lin(ks[5], h2, h3), "fb3": jnp.full((1, h3), 0.06, jnp.float32),
        "fw4": lin(ks[6], h3, output_dim),
        "fb4": jnp.full((1, output_dim), 0.07, jnp.float32),
    }


def _chain_graph(key, sizes, atom_dim):
    """Random node features + per-graph chain connectivity (both edge directions)."""
    n = sum(sizes)
    x = jax.random.normal(key, (n, atom_dim), jnp.float32)
    edges, batch = [], []
    off = 0
    for g, s in enumerate(sizes):
        for i in range(off, off + s - 1):
            edges.append((i, i + 1))
            edges.append((i + 1, i))
        batch += [g] * s
        off += s
    edge_index = jnp.array(list(zip(*edges)), dtype=jnp.int32)
    return x, edge_index, jnp.array(batch, dtype=jnp.int32)


if __name__ == "__main__":
    key = jax.random.PRNGKey(0)
    k1, k2, kp = jax.random.split(key, 3)

    ATOM_DIM, CONV_HIDDEN, OUT_DIM = 16, 32, 1
    params = init_params(kp, ATOM_DIM, CONV_HIDDEN, OUT_DIM)

    def run_case(kx, sizes, *, conv_tiles=None):
        x, edge_index, batch = _chain_graph(kx, sizes, ATOM_DIM)
        b = len(sizes)
        natoms = jnp.array([float(s) for s in sizes], jnp.float32)
        nbonds = jnp.array([float(max(s - 1, 0)) for s in sizes], jnp.float32)
        mw = 12.011 * natoms + 1.008 * nbonds
        out = gcn_regressor_forward(params, x, edge_index, batch,
                                    natoms, nbonds, mw, b, conv_tiles=conv_tiles)
        out = jax.block_until_ready(out)
        ref = reference_forward(params, x, edge_index, batch, natoms, nbonds, mw, b)
        assert out.shape == (b, OUT_DIM)
        assert bool(jnp.all(jnp.isfinite(out)))
        # bf16 A_hat / activations vs f32 reference: loose tolerance is expected.
        assert bool(jnp.allclose(out, ref, rtol=6e-2, atol=3e-1))
        return out

    # Case 1: tiny two-graph batch (N=12 -> N_pad=128, reduction-resident path).
    run_case(k1, (7, 5))
    # Case 2: three graphs, N=200 -> N_pad=256.  Default tiles take the
    # reduction-resident path; the override exercises the k-tiled accumulator path.
    run_case(k2, (80, 70, 50))
    run_case(k2, (80, 70, 50), conv_tiles=(128, 128))

    print("KERNEL_OK")
</pallas_src>

<mosaic_0001>
module attributes {stable_mosaic.version = 11 : i64} {
  func.func @_gcn_conv_kernel_single(%arg0: i32, %arg1: memref<128x128xbf16, #tpu.memory_space<vmem>>, %arg2: memref<128x128xbf16, #tpu.memory_space<vmem>>, %arg3: memref<1x128xf32, #tpu.memory_space<vmem>>, %arg4: memref<128x128xbf16, #tpu.memory_space<vmem>>, %arg5: memref<128x128xbf16, #tpu.memory_space<vmem>>) attributes {dimension_semantics = [#tpu.dimension_semantics<parallel>], iteration_bounds = array<i64: 1>, scalar_prefetch = 0 : i64, scratch_operands = 0 : i64, tpu.core_type = #tpu.core_type<tc>, window_params = [{transform_indices = @transform_0, window_bounds = array<i64: 128, 128>}, {pipeline_mode = #tpu.pipeline_mode<synchronous>, transform_indices = @transform_1, window_bounds = array<i64: 128, 128>}, {pipeline_mode = #tpu.pipeline_mode<synchronous>, transform_indices = @transform_2, window_bounds = array<i64: 1, 128>}, {pipeline_mode = #tpu.pipeline_mode<synchronous>, transform_indices = @transform_3, window_bounds = array<i64: 128, 128>}, {transform_indices = @transform_4, window_bounds = array<i64: 128, 128>}]} {
    %c0 = arith.constant 0 : index
    %c0_0 = arith.constant 0 : index
    %0 = vector.load %arg1[%c0, %c0_0] : memref<128x128xbf16, #tpu.memory_space<vmem>>, vector<128x128xbf16>
    %c0_1 = arith.constant 0 : index
    %c0_2 = arith.constant 0 : index
    %1 = vector.load %arg2[%c0_1, %c0_2] : memref<128x128xbf16, #tpu.memory_space<vmem>>, vector<128x128xbf16>
    %cst = arith.constant dense<0.000000e+00> : vector<128x128xf32>
    %2 = tpu.matmul %0, %1, %cst {dimension_numbers = #tpu.dot_dimension_numbers<[1], [0], [0], [1], [0, 0, 1, 1], [], []>} : vector<128x128xbf16>, vector<128x128xbf16>, vector<128x128xf32> -> vector<128x128xf32>
    %c0_3 = arith.constant 0 : index
    %c0_4 = arith.constant 0 : index
    %3 = vector.load %arg3[%c0_3, %c0_4] : memref<1x128xf32, #tpu.memory_space<vmem>>, vector<1x128xf32>
    %4 = vector.broadcast %3 : vector<1x128xf32> to vector<128x128xf32>
    %5 = arith.addf %2, %4 : vector<128x128xf32>
    %6 = math.tanh %5 : vector<128x128xf32>
    %7 = arith.truncf %6 : vector<128x128xf32> to vector<128x128xbf16>
    %c0_5 = arith.constant 0 : index
    %c0_6 = arith.constant 0 : index
    %8 = vector.load %arg4[%c0_5, %c0_6] : memref<128x128xbf16, #tpu.memory_space<vmem>>, vector<128x128xbf16>
    %cst_7 = arith.constant dense<0.000000e+00> : vector<128x128xf32>
    %9 = tpu.matmul %7, %8, %cst_7 {dimension_numbers = #tpu.dot_dimension_numbers<[1], [0], [0], [1], [0, 0, 1, 1], [], []>} : vector<128x128xbf16>, vector<128x128xbf16>, vector<128x128xf32> -> vector<128x128xf32>
    %10 = arith.truncf %9 : vector<128x128xf32> to vector<128x128xbf16>
    %c0_8 = arith.constant 0 : index
    %c0_9 = arith.constant 0 : index
    %11 = vector.load %arg5[%c0_8, %c0_9] : memref<128x128xbf16, #tpu.memory_space<vmem>>, vector<128x128xbf16>
    tpu.vector_store %arg5[%c0_8, %c0_9], %10 {strides = array<i32>} : memref<128x128xbf16, #tpu.memory_space<vmem>>, vector<128x128xbf16>,
    return
  }
  func.func @transform_0(%arg0: i32) -> (i32, i32) {
    %c0_i32 = arith.constant 0 : i32
    %c0_i32_0 = arith.constant 0 : i32
    return %arg0, %c0_i32 : i32, i32
  }
  func.func @transform_1(%arg0: i32) -> (i32, i32) {
    %c0_i32 = arith.constant 0 : i32
    %c0_i32_0 = arith.constant 0 : i32
    %c0_i32_1 = arith.constant 0 : i32
    return %c0_i32, %c0_i32_0 : i32, i32
  }
  func.func @transform_2(%arg0: i32) -> (i32, i32) {
    %c0_i32 = arith.constant 0 : i32
    %c0_i32_0 = arith.constant 0 : i32
    %c0_i32_1 = arith.constant 0 : i32
    return %c0_i32, %c0_i32_0 : i32, i32
  }
  func.func @transform_3(%arg0: i32) -> (i32, i32) {
    %c0_i32 = arith.constant 0 : i32
    %c0_i32_0 = arith.constant 0 : i32
    %c0_i32_1 = arith.constant 0 : i32
    return %c0_i32, %c0_i32_0 : i32, i32
  }
  func.func @transform_4(%arg0: i32) -> (i32, i32) {
    %c0_i32 = arith.constant 0 : i32
    %c0_i32_0 = arith.constant 0 : i32
    return %arg0, %c0_i32 : i32, i32
  }
}

</mosaic_0001>

<bundles_post_ra>
// kernel: tpu_custom_call.1
= control target key start
LH: loop header
LB: loop body
LE: loop exit
PB: predicated region body
PF: predicated region fallthrough
CT: control target
= control target key end

     0   :  { %9 = vsyncpa [#allocation3], 0  ;;  %s1032_s0 = inlined_call_operand.hbm [shape: bf16[128,128], index: 0, kind: input, shape index: {}]   ;;  %s1033_s1 = inlined_call_operand.hbm [shape: bf16[128,128], index: 1, kind: input, shape index: {}]   ;;  %s1034_s2 = inlined_call_operand.vmem [shape: f32[1,128], index: 2, kind: input, shape index: {}]   ;;  %s1035_s3 = inlined_call_operand.hbm [shape: bf16[128,128], index: 3, kind: input, shape index: {}]   ;;  %s1036_s4 = inlined_call_operand.hbm [shape: bf16[128,128], index: 4, kind: output, shape index: {}]  }
   0x1   :  { %10 = vsyncpa [#allocation6], 0 }
   0x2   :  { %11 = vsyncpa [#allocation4], 0  ;;  %s931_s15 = smov [#allocation5]   ;;  %s932_s17 = smov [#allocation2]  }
   0x3   :  { %s29_s16 = sshll.u32 %s931_s15, 4  ;;  %s17_s18 = sshll.u32 %s932_s17, 4  ;;  %s30_s16 = int_to_ptr.vmem [resolvable:$true] %s29_s16  ;;  %s962_s18 = int_to_ptr.vmem [resolvable:$true] %s17_s18 }
   0x4   :  { %s837_s21 = scalar_lea.hbm %s1033_s1, 1024 }
   0x5   :  { %p838_p0 = scmp.ne.s32.totalorder %s1033_s1, %s837_s21  ;;  %p841_p1 = scmp.lt.u32.totalorder %s837_s21, %s1033_s1 }
   0x7   :  { %p843_p2 = pnand %p841_p1, %p838_p0 }
   0x9   :  { %846 = shalt.err (!%p843_p2)
}
   0xa   :  { %s847_s26 = scalar_lea.vmem %s30_s16, 1024  ;;  %p852_p4 = scmp.lt.s32.totalorder %s30_s16, %s30_s16 }
   0xb   :  { %p848_p3 = scmp.ne.s32.totalorder %s30_s16, %s847_s26  ;;  %p853_p5 = scmp.lt.s32.totalorder %s847_s26, %s847_s26 }
   0xd   :  { %p854_p6 = por %p853_p5, %p852_p4 }
   0xf   :  { %p855_p7 = pnand %p854_p6, %p848_p3 }
  0x11   :  { %858 = shalt.err (!%p855_p7)
}
  0x12   :  { %s933_s27 = smov 64   ;;  %s934_s28 = smov 4  }
  0x13   :  { %35 = dma.hbm_to_vmem [thread:$0]  %s1033_s1, 1024, %s30_s16, [#allocation6], %s933_s27, %s933_s27, %s934_s28  }
  0x14   :  { %s859_s7 = scalar_lea.hbm %s1032_s0, 1024 }
  0x15   :  { %p860_p8 = scmp.ne.s32.totalorder %s1032_s0, %s859_s7  ;;  %p863_p9 = scmp.lt.u32.totalorder %s859_s7, %s1032_s0 }
  0x17   :  { %p865_p10 = pnand %p863_p9, %p860_p8 }
  0x19   :  { %868 = shalt.err (!%p865_p10)
}
  0x1a   :  { %s869_s12 = scalar_lea.vmem %s962_s18, 1024  ;;  %p874_p12 = scmp.lt.s32.totalorder %s962_s18, %s962_s18 }
  0x1b   :  { %p870_p11 = scmp.ne.s32.totalorder %s962_s18, %s869_s12  ;;  %p875_p13 = scmp.lt.s32.totalorder %s869_s12, %s869_s12 }
  0x1d   :  { %p876_p0 = por %p875_p13, %p874_p12 }
  0x1f   :  { %p877_p1 = pnand %p876_p0, %p870_p11 }
  0x21   :  { %880 = shalt.err (!%p877_p1)
}
  0x22   :  { %23 = dma.hbm_to_vmem [thread:$0]  %s1032_s0, 1024, %s962_s18, [#allocation3], %s933_s27, %s933_s27, %s934_s28  }
  0x23   :  { %s935_s14 = smov [#allocation7]   ;;  %s881_s19 = scalar_lea.hbm %s1035_s3, 1024 }
  0x24   :  { %s43_s15 = sshll.u32 %s935_s14, 4  ;;  %p882_p2 = scmp.ne.s32.totalorder %s1035_s3, %s881_s19  ;;  %s44_s15 = int_to_ptr.vmem [resolvable:$true] %s43_s15 }
  0x25   :  { %p885_p3 = scmp.lt.u32.totalorder %s881_s19, %s1035_s3 }
  0x27   :  { %p887_p4 = pnand %p885_p3, %p882_p2 }
  0x29   :  { %890 = shalt.err (!%p887_p4)
}
  0x2a   :  { %s891_s24 = scalar_lea.vmem %s44_s15, 1024  ;;  %p896_p6 = scmp.lt.s32.totalorder %s44_s15, %s44_s15 }
  0x2b   :  { %p892_p5 = scmp.ne.s32.totalorder %s44_s15, %s891_s24  ;;  %p897_p7 = scmp.lt.s32.totalorder %s891_s24, %s891_s24 }
  0x2d   :  { %p898_p8 = por %p897_p7, %p896_p6 }
  0x2f   :  { %p899_p9 = pnand %p898_p8, %p892_p5 }
  0x31   :  { %902 = shalt.err (!%p899_p9)
}
  0x32   :  { %49 = dma.hbm_to_vmem [thread:$0]  %s1035_s3, 1024, %s44_s15, [#allocation6], %s933_s27, %s933_s27, %s934_s28  }
  0x33   :  { %925 = dma.done.wait [#allocation3], 1024  }
  0x34   :  { %926 = vsyncadd [#allocation3], 4294966272 }
  0x35   :  { %927 = dma.done.wait [#allocation6], 2048  }
  0x36   :  { %928 = vsyncadd [#allocation6], 4294965248  ;;  %v781_v0 = vld [vmem:[#allocation5] sm:$0xff]   ;;  %v782_v1 = vld [vmem:[#allocation5 + $0x8] sm:$0xff]  }
  0x37   :  { %711 = vmatprep.subr.bf16.mxu0 %v781_v0  ;;  %v783_v2 = vld [vmem:[#allocation5 + $0x10] sm:$0xff]   ;;  %v784_v3 = vld [vmem:[#allocation5 + $0x18] sm:$0xff]   ;;  %v789_v4 = vld [vmem:[#allocation2] sm:$0xff]  }
  0x38   :  { %712 = vmatpush3.bf16.msra.mxu0 %v781_v0  ;;  %727 = vmatprep.mubr.bf16.mxu0 %v789_v4  ;;  %v785_v5 = vld [vmem:[#allocation5 + $0x20] sm:$0xff]   ;;  %v786_v6 = vld [vmem:[#allocation5 + $0x28] sm:$0xff]   ;;  %v787_v9 = vld [vmem:[#allocation5 + $0x30] sm:$0xff]  }
  0x39   :  { %713 = vmatprep.subr.bf16.mxu0 %v782_v1  ;;  %v797_v7 = vld [vmem:[#allocation7] sm:$0xff]   ;;  %v798_v8 = vld [vmem:[#allocation7 + $0x8] sm:$0xff]   ;;  %v799_v10 = vld [vmem:[#allocation7 + $0x10] sm:$0xff]  }
  0x3a   :  { %743 = vmatprep.subr.bf16.mxu1 %v797_v7  ;;  %v788_v11 = vld [vmem:[#allocation5 + $0x38] sm:$0xff]   ;;  %v790_v12 = vld [vmem:[#allocation2 + $0x8] sm:$0xff]   ;;  %v791_v13 = vld [vmem:[#allocation2 + $0x10] sm:$0xff]  }
  0x3b   :  { %744 = vmatpush3.bf16.msra.mxu1 %v797_v7  ;;  %v792_v14 = vld [vmem:[#allocation2 + $0x18] sm:$0xff]   ;;  %v793_v15 = vld [vmem:[#allocation2 + $0x20] sm:$0xff]   ;;  %v794_v16 = vld [vmem:[#allocation2 + $0x28] sm:$0xff]  }
  0x3c   :  { %714 = vmatpush3.bf16.msra.mxu0 %v782_v1  ;;  %745 = vmatprep.subr.bf16.mxu1 %v798_v8  ;;  %v795_v17 = vld [vmem:[#allocation2 + $0x30] sm:$0xff]   ;;  %v796_v18 = vld [vmem:[#allocation2 + $0x38] sm:$0xff]   ;;  %v801_v20 = vld [vmem:[#allocation7 + $0x20] sm:$0xff]  }
  0x3d   :  { %715 = vmatprep.subr.bf16.mxu0 %v783_v2  ;;  %v800_v19 = vld [vmem:[#allocation7 + $0x18] sm:$0xff]   ;;  %v802_v21 = vld [vmem:[#allocation7 + $0x28] sm:$0xff]   ;;  %v803_v22 = vld [vmem:[#allocation7 + $0x30] sm:$0xff]  }
  0x3e   :  { %v804_v23 = vld [vmem:[#allocation7 + $0x38] sm:$0xff]   ;;  %v575_v24 = vld [vmem:[%s1034_s2] ss:$0 sm:$0xff]  ;;  %s936_s2 = smov [#allocation8]  }
  0x3f   :  { %746 = vmatpush3.bf16.msra.mxu1 %v798_v8  ;;  %s562_s26 = sshll.u32 %s936_s2, 4  ;;  %s563_s26 = int_to_ptr.vmem [resolvable:$true] %s562_s26 }
  0x40   :  { %716 = vmatpush3.bf16.msra.mxu0 %v783_v2  ;;  %747 = vmatprep.subr.bf16.mxu1 %v799_v10  ;;  %s903_s29 = scalar_lea.vmem %s563_s26, 1024  ;;  %p908_p11 = scmp.lt.s32.totalorder %s563_s26, %s563_s26 }
  0x41   :  { %717 = vmatprep.subr.bf16.mxu0 %v784_v3  ;;  %p904_p10 = scmp.ne.s32.totalorder %s563_s26, %s903_s29  ;;  %p909_p12 = scmp.lt.s32.totalorder %s903_s29, %s903_s29 }
  0x43   :  { %748 = vmatpush3.bf16.msra.mxu1 %v799_v10  ;;  %p910_p13 = por %p909_p12, %p908_p11 }
  0x44   :  { %718 = vmatpush3.bf16.msra.mxu0 %v784_v3  ;;  %749 = vmatprep.subr.bf16.mxu1 %v800_v19 }
  0x45   :  { %719 = vmatprep.subr.bf16.mxu0 %v785_v5  ;;  %p911_p0 = pnand %p910_p13, %p904_p10 }
  0x47   :  { %750 = vmatpush3.bf16.msra.mxu1 %v800_v19 }
  0x48   :  { %720 = vmatpush3.bf16.msra.mxu0 %v785_v5  ;;  %751 = vmatprep.subr.bf16.mxu1 %v801_v20 }
  0x49   :  { %721 = vmatprep.subr.bf16.mxu0 %v786_v6 }
  0x4b   :  { %752 = vmatpush3.bf16.msra.mxu1 %v801_v20 }
  0x4c   :  { %722 = vmatpush3.bf16.msra.mxu0 %v786_v6  ;;  %753 = vmatprep.subr.bf16.mxu1 %v802_v21 }
  0x4d   :  { %723 = vmatprep.subr.bf16.mxu0 %v787_v9 }
  0x4f   :  { %754 = vmatpush3.bf16.msra.mxu1 %v802_v21 }
  0x50   :  { %724 = vmatpush3.bf16.msra.mxu0 %v787_v9  ;;  %755 = vmatprep.subr.bf16.mxu1 %v803_v22 }
  0x51   :  { %725 = vmatprep.subr.bf16.mxu0 %v788_v11 }
  0x53   :  { %756 = vmatpush3.bf16.msra.mxu1 %v803_v22 }
  0x54   :  { %726 = vmatpush3.bf16.msra.mxu0 %v788_v11  ;;  %757 = vmatprep.subr.bf16.mxu1 %v804_v23 }
  0x57   :  { %728 = vmatmul.mubr.bf16.vlgmr.msra.gmra.mrb[0].mxu0 %v790_v12  ;;  %758 = vmatpush3.bf16.msra.mxu1 %v804_v23 }
  0x58   :  { %731 = vmatprep.mubr.bf16.mxu0 %v791_v13 }
  0x5f   :  { %732 = vmatmul.mubr.bf16.gmra.mrb[4].mxu0 %v792_v14 }
  0x60   :  { %735 = vmatprep.mubr.bf16.mxu0 %v793_v15 }
  0x67   :  { %736 = vmatmul.mubr.bf16.gmra.mrb[8].mxu0 %v794_v16 }
  0x68   :  { %739 = vmatprep.mubr.bf16.mxu0 %v795_v17 }
  0x6f   :  { %740 = vmatmul.mubr.bf16.gmra.mrb[12].mxu0 %v796_v18 }
 0x12a   :  { %v729_v25 = vpop.f32.mrb[0].mxu0 }
 0x12b   :  { %v238_v26 = vadd.f32 %v729_v25, %v575_v24  ;;  %v229_v27 = vpop.f32.mrb[1].mxu0 }
 0x12c   :  { %v230_v28 = vadd.f32 %v575_v24, %v229_v27  ;;  %v730_v29 = vpop.f32.mrb[2].mxu0 }
 0x12d   :  { %805 = vtanh.f32 %v238_v26  ;;  %v241_v30 = vadd.f32 %v730_v29, %v575_v24  ;;  %v232_v31 = vpop.f32.mrb[3].mxu0 }
 0x12e   :  { %807 = vtanh.f32 %v230_v28  ;;  %v233_v32 = vadd.f32 %v575_v24, %v232_v31 }
 0x12f   :  { %809 = vtanh.f32 %v241_v30 }
 0x130   :  { %811 = vtanh.f32 %v233_v32 }
 0x132   :  { %v733_v33 = vpop.f32.mrb[4].mxu0 }
 0x133   :  { %v254_v34 = vadd.f32 %v733_v33, %v575_v24  ;;  %v245_v35 = vpop.f32.mrb[5].mxu0 }
 0x134   :  { %v246_v36 = vadd.f32 %v575_v24, %v245_v35  ;;  %v734_v37 = vpop.f32.mrb[6].mxu0 }
 0x135   :  { %813 = vtanh.f32 %v254_v34  ;;  %v257_v38 = vadd.f32 %v734_v37, %v575_v24  ;;  %v248_v39 = vpop.f32.mrb[7].mxu0 }
 0x136   :  { %815 = vtanh.f32 %v246_v36  ;;  %v249_v40 = vadd.f32 %v575_v24, %v248_v39 }
 0x137   :  { %v806_v41 = vpop.eup %805  ;;  %817 = vtanh.f32 %v257_v38 }
 0x138   :  { %v808_v42 = vpop.eup %807  ;;  %819 = vtanh.f32 %v249_v40 }
 0x139   :  { %v810_v43 = vpop.eup %809 }
 0x13a   :  { %v812_v44 = vpop.eup %811  ;;  %v737_v45 = vpop.f32.mrb[8].mxu0  ;;  %v309_v46 = vpack.c.bf16 %v810_v43, %v806_v41 }
 0x13b   :  { %v270_v47 = vadd.f32 %v737_v45, %v575_v24  ;;  %v261_v48 = vpop.f32.mrb[9].mxu0  ;;  %v308_v49 = vpack.c.bf16 %v812_v44, %v808_v42 }
 0x13c   :  { %v262_v50 = vadd.f32 %v575_v24, %v261_v48  ;;  %v738_v51 = vpop.f32.mrb[10].mxu0 }
 0x13d   :  { %821 = vtanh.f32 %v270_v47  ;;  %v273_v52 = vadd.f32 %v738_v51, %v575_v24  ;;  %v264_v53 = vpop.f32.mrb[11].mxu0  ;;  %759 = vmatprep.mubr.bf16.mxu1 %v308_v49 }
 0x13e   :  { %823 = vtanh.f32 %v262_v50  ;;  %v265_v54 = vadd.f32 %v575_v24, %v264_v53  ;;  %760 = vmatmul.mubr.bf16.vlgmr.msra.gmra.mrb[0].mxu1 %v309_v46 }
 0x13f   :  { %v814_v55 = vpop.eup %813  ;;  %825 = vtanh.f32 %v273_v52 }
 0x140   :  { %v816_v56 = vpop.eup %815  ;;  %827 = vtanh.f32 %v265_v54 }
 0x141   :  { %v818_v57 = vpop.eup %817 }
 0x142   :  { %v820_v58 = vpop.eup %819  ;;  %v741_v59 = vpop.f32.mrb[12].mxu0  ;;  %v311_v60 = vpack.c.bf16 %v818_v57, %v814_v55 }
 0x143   :  { %v286_v61 = vadd.f32 %v741_v59, %v575_v24  ;;  %v277_v62 = vpop.f32.mrb[13].mxu0  ;;  %v310_v63 = vpack.c.bf16 %v820_v58, %v816_v56 }
 0x144   :  { %v278_v0 = vadd.f32 %v575_v24, %v277_v62  ;;  %v742_v1 = vpop.f32.mrb[14].mxu0 }
 0x145   :  { %829 = vtanh.f32 %v286_v61  ;;  %v289_v2 = vadd.f32 %v742_v1, %v575_v24  ;;  %v280_v3 = vpop.f32.mrb[15].mxu0  ;;  %763 = vmatprep.mubr.bf16.mxu1 %v310_v63 }
 0x146   :  { %831 = vtanh.f32 %v278_v0  ;;  %v281_v4 = vadd.f32 %v575_v24, %v280_v3  ;;  %764 = vmatmul.mubr.bf16.gmra.mrb[4].mxu1 %v311_v60 }
 0x147   :  { %v822_v5 = vpop.eup %821  ;;  %833 = vtanh.f32 %v289_v2 }
 0x148   :  { %v824_v6 = vpop.eup %823  ;;  %835 = vtanh.f32 %v281_v4 }
 0x149   :  { %v826_v7 = vpop.eup %825 }
 0x14a   :  { %v828_v8 = vpop.eup %827  ;;  %v313_v9 = vpack.c.bf16 %v826_v7, %v822_v5 }
 0x14b   :  { %v312_v10 = vpack.c.bf16 %v828_v8, %v824_v6 }
 0x14d   :  { %767 = vmatprep.mubr.bf16.mxu1 %v312_v10 }
 0x14e   :  { %768 = vmatmul.mubr.bf16.gmra.mrb[8].mxu1 %v313_v9 }
 0x14f   :  { %v830_v11 = vpop.eup %829 }
 0x150   :  { %v832_v12 = vpop.eup %831 }
 0x151   :  { %v834_v13 = vpop.eup %833 }
 0x152   :  { %v836_v14 = vpop.eup %835  ;;  %v315_v15 = vpack.c.bf16 %v834_v13, %v830_v11 }
 0x153   :  { %v314_v16 = vpack.c.bf16 %v836_v14, %v832_v12 }
 0x155   :  { %771 = vmatprep.mubr.bf16.mxu1 %v314_v16 }
 0x156   :  { %772 = vmatmul.mubr.bf16.gmra.mrb[12].mxu1 %v315_v15 }
 0x211   :  { %v761_v17 = vpop.f32.mrb[0].mxu1 }
 0x212   :  { %v414_v18 = vpop.f32.mrb[1].mxu1 }
 0x213   :  { %v762_v19 = vpop.f32.mrb[2].mxu1 }
 0x214   :  { %v640_v20 = vpack.c.bf16 %v762_v19, %v761_v17  ;;  %v417_v21 = vpop.f32.mrb[3].mxu1 }
 0x215   :  { %v635_v22 = vpack.c.bf16 %v417_v21, %v414_v18 }
 0x216   :  { %672 = vst [vmem:[#allocation8 + $0x8] sm:$0xff] %v640_v20  }
 0x217   :  { %636 = vst [vmem:[#allocation8] sm:$0xff] %v635_v22  }
 0x219   :  { %v765_v23 = vpop.f32.mrb[4].mxu1 }
 0x21a   :  { %v430_v24 = vpop.f32.mrb[5].mxu1 }
 0x21b   :  { %v766_v25 = vpop.f32.mrb[6].mxu1 }
 0x21c   :  { %v650_v26 = vpack.c.bf16 %v766_v25, %v765_v23  ;;  %v433_v27 = vpop.f32.mrb[7].mxu1 }
 0x21d   :  { %v645_v28 = vpack.c.bf16 %v433_v27, %v430_v24 }
 0x21e   :  { %674 = vst [vmem:[#allocation8 + $0x18] sm:$0xff] %v650_v26  }
 0x21f   :  { %673 = vst [vmem:[#allocation8 + $0x10] sm:$0xff] %v645_v28  }
 0x221   :  { %v769_v29 = vpop.f32.mrb[8].mxu1 }
 0x222   :  { %v446_v30 = vpop.f32.mrb[9].mxu1 }
 0x223   :  { %v770_v31 = vpop.f32.mrb[10].mxu1 }
 0x224   :  { %v660_v32 = vpack.c.bf16 %v770_v31, %v769_v29  ;;  %v449_v33 = vpop.f32.mrb[11].mxu1 }
 0x225   :  { %v655_v34 = vpack.c.bf16 %v449_v33, %v446_v30 }
 0x226   :  { %676 = vst [vmem:[#allocation8 + $0x28] sm:$0xff] %v660_v32  }
 0x227   :  { %675 = vst [vmem:[#allocation8 + $0x20] sm:$0xff] %v655_v34  }
 0x229   :  { %v773_v35 = vpop.f32.mrb[12].mxu1 }
 0x22a   :  { %v462_v36 = vpop.f32.mrb[13].mxu1 }
 0x22b   :  { %v774_v37 = vpop.f32.mrb[14].mxu1 }
 0x22c   :  { %v670_v38 = vpack.c.bf16 %v774_v37, %v773_v35  ;;  %v465_v39 = vpop.f32.mrb[15].mxu1 }
 0x22d   :  { %v665_v40 = vpack.c.bf16 %v465_v39, %v462_v36 }
 0x22e   :  { %678 = vst [vmem:[#allocation8 + $0x38] sm:$0xff] %v670_v38  }
 0x22f   :  { %677 = vst [vmem:[#allocation8 + $0x30] sm:$0xff] %v665_v40  }
 0x230   :  { %914 = shalt.err (!%p911_p0)
}
 0x231   :  { %s915_s6 = scalar_lea.hbm %s1036_s4, 1024 }
 0x232   :  { %p916_p1 = scmp.ne.s32.totalorder %s1036_s4, %s915_s6  ;;  %p919_p2 = scmp.lt.u32.totalorder %s915_s6, %s1036_s4 }
 0x234   :  { %p921_p3 = pnand %p919_p2, %p916_p1 }
 0x236   :  { %924 = shalt.err (!%p921_p3)
}
 0x237   :  { %568 = dma.vmem_to_hbm [thread:$0]  %s563_s26, 1024, %s1036_s4, [#allocation4], %s933_s27, %s933_s27, %s934_s28  }
 0x238   :  { %929 = dma.done.wait [#allocation4], 1024  }
 0x239   :  { %930 = vsyncadd [#allocation4], 4294966272 }
 0x23a   :  { %572 = vsyncpa [#allocation3], 1 }
 0x23b   :  { %573 = vsyncpa [#allocation6], 1 }
 0x23c   :  { %574 = vsyncpa [#allocation4], 1 }

</bundles_post_ra>
